<compile_context>
chip_gen: v7x
topology: tpu7x:2x2x1
jax: 0.10.0
libtpu: 0.0.40
codegen_flags: <defaults>
</compile_context>

<pallas_src>
import math

import jax
import jax.numpy as jnp
from jax import lax
from jax.experimental import pallas as pl
from jax.experimental.pallas import tpu as pltpu


def _round_up(x, m):
    return (x + m - 1) // m * m


def _leaky_relu(x, slope=0.01):
    return jnp.where(x >= 0, x, slope * x)


def _vmem_capacity_bytes():
    try:
        return int(pltpu.get_tpu_info().vmem_capacity_bytes)
    except Exception:  # not on TPU / old runtime: conservative fallback
        return 64 * 1024 * 1024


def discriminator_kernel(x_ref, w1_ref, w2_ref, bvec_ref, b3_ref, o_ref):
    # x_ref: (TB, D) bf16.  bvec_ref: (H, 3) f32 = [b1 | b2 | w3].
    x = x_ref[...]
    b1 = bvec_ref[:, 0:1]        # (H, 1)
    b2 = bvec_ref[:, 1:2]        # (H, 1)
    w3 = bvec_ref[:, 2:3]        # (H, 1)

    # Layer 1: Linear(D->H) + LeakyReLU(0.01).  Contract on D of both operands;
    # the MXU/Mosaic handles the operand reorientation on-chip.  Result (H, TB).
    h = lax.dot_general(w1_ref[...], x,
                        dimension_numbers=(((1,), (1,)), ((), ())),
                        preferred_element_type=jnp.float32)
    h = _leaky_relu(h + b1)

    # Layer 2: Linear(H->H) + LeakyReLU(0.01).  Dropout == identity (eval mode).
    h = jnp.dot(w2_ref[...], h.astype(jnp.bfloat16),
                preferred_element_type=jnp.float32)                 # (H, TB) f32
    h = _leaky_relu(h + b2)

    # Layer 3: Linear(H->1) as a VPU multiply + cross-sublane reduce, done in
    # sublane strips to keep the peak f32 footprint low (an H->1 matmul would
    # light only one MXU column anyway).
    H, tb = h.shape
    z = jnp.zeros((1, tb), jnp.float32)
    strip = 256
    for c in range(0, H, strip):
        z = z + jnp.sum(h[c:c + strip] * w3[c:c + strip], axis=0, keepdims=True)
    z = z + b3_ref[0, 0]

    # Sigmoid (exact reciprocal; EUP/VPU cost is off the critical path here),
    # then clamp(min=1e-9).
    p = 1.0 / (1.0 + jnp.exp(-z))
    o_ref[...] = jnp.maximum(p, 1e-9).astype(o_ref.dtype).reshape(o_ref.shape)


def discriminator_forward(x, params, *, tile_b=1024):
    """x: (B, img_size) float32.

    params in PyTorch nn.Linear layout:
      w1 (H, D), b1 (H,), w2 (H, H), b2 (H,), w3 (1, H), b3 (1,)
    Returns (B, 1) float32 probabilities.
    """
    B, D = x.shape
    H = params["w1"].shape[0]

    # ---- VMEM budget (generation-aware) ------------------------------------
    cap = _vmem_capacity_bytes()
    budget = int(cap * 7 // 8)            # ~112 MiB on v5e/v6e, ~56 MiB on v7x

    # Resident bytes independent of the batch tile: single-buffered weights
    # (bf16) + one lane-padded (H, 3)->(H, 128) f32 bias pack + slack.
    fixed_bytes = (H * D + H * H) * 2 + _round_up(H, 8) * 128 * 4 + (1 << 16)
    # Per-batch-column bytes: double-buffered x tile (bf16) + double-buffered
    # output tile (sublane-padded f32) + ~4 live (H, tb) f32 intermediates.
    per_col = 2 * D * 2 + 2 * 8 * 4 + 4 * H * 4

    tb_fit = max(128, ((budget - fixed_bytes) // max(per_col, 1)) // 128 * 128)
    tb = min(_round_up(B, 128), _round_up(tile_b, 128), tb_fit)
    # Keep >= 2 'parallel' grid steps for larger batches so both v7x TCs get
    # work (harmless ~0.35 us of extra per-step overhead on single-TC parts).
    if B >= 256:
        tb = min(tb, max(128, (_round_up(B, 128) // 2) // 128 * 128))

    Bp = _round_up(B, tb)
    T = Bp // tb

    needed = fixed_bytes + tb * per_col
    vmem_limit = int(min(max(needed + needed // 2, 32 * 1024 * 1024), budget))

    # ---- Operand prep (fuses into one pass when the wrapper is jitted) -----
    x_p = jnp.pad(x, ((0, Bp - B), (0, 0))).astype(jnp.bfloat16)     # (Bp, D)
    w1 = params["w1"].astype(jnp.bfloat16)                            # (H, D)
    w2 = params["w2"].astype(jnp.bfloat16)                            # (H, H)
    bvec = jnp.stack([params["b1"].astype(jnp.float32),
                      params["b2"].astype(jnp.float32),
                      params["w3"].reshape(H).astype(jnp.float32)],
                     axis=1)                                          # (H, 3)
    b3 = params["b3"].reshape(1, 1).astype(jnp.float32)               # SMEM scalar

    in_specs = [
        pl.BlockSpec((tb, D), lambda i: (i, 0)),                      # x tile
        pl.BlockSpec((H, D), lambda i: (0, 0),
                     pipeline_mode=pl.Buffered(1)),                   # w1 (resident)
        pl.BlockSpec((H, H), lambda i: (0, 0),
                     pipeline_mode=pl.Buffered(1)),                   # w2 (resident)
        pl.BlockSpec((H, 3), lambda i: (0, 0),
                     pipeline_mode=pl.Buffered(1)),                   # b1|b2|w3 pack
        pl.BlockSpec(memory_space=pltpu.MemorySpace.SMEM),            # b3 scalar
    ]
    # Lane-dense output rows; last two block dims equal the full array dims.
    out_specs = pl.BlockSpec((1, 1, tb), lambda i: (i, 0, 0))

    out = pl.pallas_call(
        discriminator_kernel,
        out_shape=jax.ShapeDtypeStruct((T, 1, tb), jnp.float32),
        grid_spec=pltpu.PrefetchScalarGridSpec(
            num_scalar_prefetch=0,
            grid=(T,),
            in_specs=in_specs,
            out_specs=out_specs,
        ),
        compiler_params=pltpu.CompilerParams(
            dimension_semantics=("parallel",),
            vmem_limit_bytes=vmem_limit,
        ),
    )(x_p, w1, w2, bvec, b3)

    return out.reshape(Bp, 1)[:B]


def init_params(key, img_size, hidden_size):
    """Deterministic init matching PyTorch nn.Linear shapes (out_features, in_features)."""
    ks = jax.random.split(key, 6)

    def lin(kw, kb, fan_in, fan_out):
        bound = 1.0 / math.sqrt(fan_in)
        w = jax.random.uniform(kw, (fan_out, fan_in), jnp.float32, -bound, bound)
        b = jax.random.uniform(kb, (fan_out,), jnp.float32, -bound, bound)
        return w, b

    w1, b1 = lin(ks[0], ks[1], img_size, hidden_size)
    w2, b2 = lin(ks[2], ks[3], hidden_size, hidden_size)
    w3, b3 = lin(ks[4], ks[5], hidden_size, 1)
    return {"w1": w1, "b1": b1, "w2": w2, "b2": b2, "w3": w3, "b3": b3}


def reference_forward(x, p):
    """Pure f32 JAX reference (eval-mode dropout)."""
    h = _leaky_relu(x @ p["w1"].T + p["b1"][None, :])
    h = _leaky_relu(h @ p["w2"].T + p["b2"][None, :])
    z = h @ p["w3"].T + p["b3"][None, :]
    return jnp.maximum(jax.nn.sigmoid(z), 1e-9)


if __name__ == "__main__":
    # Small image-like input: (B, C, Hs, Ws) -> flattened img_size = C*Hs*Ws.
    B, C, Hs, Ws = 4, 1, 16, 16
    img_size = C * Hs * Ws          # 256
    hidden_size = 32

    key = jax.random.PRNGKey(0)
    kx, kp = jax.random.split(key)
    imgs = jax.random.normal(kx, (B, C, Hs, Ws), jnp.float32)
    x = imgs.reshape(-1, img_size)  # matches x.view(-1, img_size)

    params = init_params(kp, img_size, hidden_size)

    fwd = jax.jit(lambda xx: discriminator_forward(xx, params))
    out = jax.block_until_ready(fwd(x))
    ref = reference_forward(x, params)

    assert out.shape == (B, 1)
    # bf16 matmul operands vs. full-f32 reference.
    max_diff = float(jnp.max(jnp.abs(out - ref)))
    assert jnp.allclose(out, ref, atol=1e-2, rtol=0.0), f"mismatch vs reference: {max_diff}"

    print("KERNEL_OK")
</pallas_src>

<mosaic_0001>
module attributes {stable_mosaic.version = 11 : i64} {
  func.func @discriminator_kernel(%arg0: i32, %arg1: memref<128x256xbf16, #tpu.memory_space<vmem>>, %arg2: memref<32x256xbf16, #tpu.memory_space<vmem>>, %arg3: memref<32x32xbf16, #tpu.memory_space<vmem>>, %arg4: memref<32x3xf32, #tpu.memory_space<vmem>>, %arg5: memref<1x1xf32, #tpu.memory_space<smem>>, %arg6: memref<1x1x128xf32, #tpu.memory_space<vmem>>) attributes {dimension_semantics = [#tpu.dimension_semantics<parallel>], iteration_bounds = array<i64: 1>, scalar_prefetch = 0 : i64, scratch_operands = 0 : i64, tpu.core_type = #tpu.core_type<tc>, window_params = [{transform_indices = @transform_0, window_bounds = array<i64: 128, 256>}, {pipeline_mode = #tpu.pipeline_mode<synchronous>, transform_indices = @transform_1, window_bounds = array<i64: 32, 256>}, {pipeline_mode = #tpu.pipeline_mode<synchronous>, transform_indices = @transform_2, window_bounds = array<i64: 32, 32>}, {pipeline_mode = #tpu.pipeline_mode<synchronous>, transform_indices = @transform_3, window_bounds = array<i64: 32, 3>}, {transform_indices = @transform_4, window_bounds = array<i64: 1, 1>}, {transform_indices = @transform_5, window_bounds = array<i64: 1, 1, 128>}]} {
    %c0 = arith.constant 0 : index
    %c0_0 = arith.constant 0 : index
    %0 = vector.load %arg1[%c0, %c0_0] : memref<128x256xbf16, #tpu.memory_space<vmem>>, vector<128x256xbf16>
    %c0_1 = arith.constant 0 : index
    %c0_2 = arith.constant 0 : index
    %1 = vector.load %arg4[%c0_1, %c0_2] : memref<32x3xf32, #tpu.memory_space<vmem>>, vector<32x1xf32>
    %c0_3 = arith.constant 0 : index
    %c1 = arith.constant 1 : index
    %2 = vector.load %arg4[%c0_3, %c1] : memref<32x3xf32, #tpu.memory_space<vmem>>, vector<32x1xf32>
    %c0_4 = arith.constant 0 : index
    %c2 = arith.constant 2 : index
    %3 = vector.load %arg4[%c0_4, %c2] : memref<32x3xf32, #tpu.memory_space<vmem>>, vector<32x1xf32>
    %c0_5 = arith.constant 0 : index
    %c0_6 = arith.constant 0 : index
    %4 = vector.load %arg2[%c0_5, %c0_6] : memref<32x256xbf16, #tpu.memory_space<vmem>>, vector<32x256xbf16>
    %cst = arith.constant dense<0.000000e+00> : vector<32x128xf32>
    %5 = tpu.matmul %4, %0, %cst {dimension_numbers = #tpu.dot_dimension_numbers<[1], [1], [0], [0], [0, 0, 1, 0], [], []>} : vector<32x256xbf16>, vector<128x256xbf16>, vector<32x128xf32> -> vector<32x128xf32>
    %6 = vector.broadcast %1 : vector<32x1xf32> to vector<32x128xf32>
    %7 = arith.addf %5, %6 : vector<32x128xf32>
    %cst_7 = arith.constant 0.000000e+00 : f32
    %8 = vector.broadcast %cst_7 : f32 to vector<32x128xf32>
    %9 = arith.cmpf oge, %7, %8 : vector<32x128xf32>
    %cst_8 = arith.constant 0.00999999977 : f32
    %10 = vector.broadcast %cst_8 : f32 to vector<32x128xf32>
    %11 = arith.mulf %10, %7 : vector<32x128xf32>
    %12 = arith.select %9, %7, %11 : vector<32x128xi1>, vector<32x128xf32>
    %c0_9 = arith.constant 0 : index
    %c0_10 = arith.constant 0 : index
    %13 = vector.load %arg3[%c0_9, %c0_10] : memref<32x32xbf16, #tpu.memory_space<vmem>>, vector<32x32xbf16>
    %14 = arith.truncf %12 : vector<32x128xf32> to vector<32x128xbf16>
    %cst_11 = arith.constant dense<0.000000e+00> : vector<32x128xf32>
    %15 = tpu.matmul %13, %14, %cst_11 {dimension_numbers = #tpu.dot_dimension_numbers<[1], [0], [0], [1], [0, 0, 1, 1], [], []>} : vector<32x32xbf16>, vector<32x128xbf16>, vector<32x128xf32> -> vector<32x128xf32>
    %16 = vector.broadcast %2 : vector<32x1xf32> to vector<32x128xf32>
    %17 = arith.addf %15, %16 : vector<32x128xf32>
    %cst_12 = arith.constant 0.000000e+00 : f32
    %18 = vector.broadcast %cst_12 : f32 to vector<32x128xf32>
    %19 = arith.cmpf oge, %17, %18 : vector<32x128xf32>
    %cst_13 = arith.constant 0.00999999977 : f32
    %20 = vector.broadcast %cst_13 : f32 to vector<32x128xf32>
    %21 = arith.mulf %20, %17 : vector<32x128xf32>
    %22 = arith.select %19, %17, %21 : vector<32x128xi1>, vector<32x128xf32>
    %cst_14 = arith.constant 0.000000e+00 : f32
    %23 = vector.broadcast %cst_14 : f32 to vector<1x128xf32>
    %24 = vector.broadcast %3 : vector<32x1xf32> to vector<32x128xf32>
    %25 = arith.mulf %22, %24 : vector<32x128xf32>
    %cst_15 = arith.constant dense<0.000000e+00> : vector<128xf32>
    %26 = vector.multi_reduction <add>, %25, %cst_15 [0] : vector<32x128xf32> to vector<128xf32>
    %27 = vector.shape_cast %26 : vector<128xf32> to vector<1x128xf32>
    %28 = arith.addf %23, %27 : vector<1x128xf32>
    %c0_16 = arith.constant 0 : index
    %c0_17 = arith.constant 0 : index
    %29 = memref.load %arg5[%c0_16, %c0_17] : memref<1x1xf32, #tpu.memory_space<smem>>
    %30 = vector.broadcast %29 : f32 to vector<1x128xf32>
    %31 = arith.addf %28, %30 : vector<1x128xf32>
    %cst_18 = arith.constant 0.000000e+00 : f32
    %32 = vector.broadcast %cst_18 : f32 to vector<1x128xf32>
    %33 = arith.subf %32, %31 : vector<1x128xf32>
    %34 = math.exp %33 : vector<1x128xf32>
    %cst_19 = arith.constant 1.000000e+00 : f32
    %35 = vector.broadcast %cst_19 : f32 to vector<1x128xf32>
    %36 = arith.addf %35, %34 : vector<1x128xf32>
    %cst_20 = arith.constant 1.000000e+00 : f32
    %37 = vector.broadcast %cst_20 : f32 to vector<1x128xf32>
    %38 = arith.divf %37, %36 : vector<1x128xf32>
    %cst_21 = arith.constant 9.99999971E-10 : f32
    %39 = vector.broadcast %cst_21 : f32 to vector<1x128xf32>
    %40 = arith.maximumf %38, %39 : vector<1x128xf32>
    %41 = vector.shape_cast %40 : vector<1x128xf32> to vector<1x1x128xf32>
    %c0_22 = arith.constant 0 : index
    %c0_23 = arith.constant 0 : index
    %c0_24 = arith.constant 0 : index
    %42 = vector.load %arg6[%c0_22, %c0_23, %c0_24] : memref<1x1x128xf32, #tpu.memory_space<vmem>>, vector<1x1x128xf32>
    tpu.vector_store %arg6[%c0_22, %c0_23, %c0_24], %41 {strides = array<i32>} : memref<1x1x128xf32, #tpu.memory_space<vmem>>, vector<1x1x128xf32>,
    return
  }
  func.func @transform_0(%arg0: i32) -> (i32, i32) {
    %c0_i32 = arith.constant 0 : i32
    %c0_i32_0 = arith.constant 0 : i32
    return %arg0, %c0_i32 : i32, i32
  }
  func.func @transform_1(%arg0: i32) -> (i32, i32) {
    %c0_i32 = arith.constant 0 : i32
    %c0_i32_0 = arith.constant 0 : i32
    %c0_i32_1 = arith.constant 0 : i32
    return %c0_i32, %c0_i32_0 : i32, i32
  }
  func.func @transform_2(%arg0: i32) -> (i32, i32) {
    %c0_i32 = arith.constant 0 : i32
    %c0_i32_0 = arith.constant 0 : i32
    %c0_i32_1 = arith.constant 0 : i32
    return %c0_i32, %c0_i32_0 : i32, i32
  }
  func.func @transform_3(%arg0: i32) -> (i32, i32) {
    %c0_i32 = arith.constant 0 : i32
    %c0_i32_0 = arith.constant 0 : i32
    %c0_i32_1 = arith.constant 0 : i32
    return %c0_i32, %c0_i32_0 : i32, i32
  }
  func.func @transform_4(%arg0: i32) -> (i32, i32) {
    %c0_i32 = arith.constant 0 : i32
    %c0_i32_0 = arith.constant 0 : i32
    %c0_i32_1 = arith.constant 0 : i32
    return %c0_i32, %c0_i32_0 : i32, i32
  }
  func.func @transform_5(%arg0: i32) -> (i32, i32, i32) {
    %c0_i32 = arith.constant 0 : i32
    %c0_i32_0 = arith.constant 0 : i32
    %c0_i32_1 = arith.constant 0 : i32
    return %arg0, %c0_i32, %c0_i32_0 : i32, i32, i32
  }
}

</mosaic_0001>

<bundles_post_ra>
// kernel: _lambda_.1
= control target key start
LH: loop header
LB: loop body
LE: loop exit
PB: predicated region body
PF: predicated region fallthrough
CT: control target
= control target key end

     0   :  { %v453_v1 = vmov 0   ;;  %vm259_vm0 = vcmask 261120   ;;  %v454_v26 = vmov 1   ;;  %v455_v27 = vmov 2   ;;  %s572_s0 = inlined_call_operand.vmem [shape: bf16[128,256], index: 0, kind: input, shape index: {}]   ;;  %s573_s1 = inlined_call_operand.vmem [shape: bf16[32,256], index: 1, kind: input, shape index: {}]   ;;  %s574_s3 = inlined_call_operand.vmem [shape: f32[32,3], index: 3, kind: input, shape index: {}]   ;;  %s575_s2 = inlined_call_operand.vmem [shape: bf16[32,32], index: 2, kind: input, shape index: {}]   ;;  %s576_s4 = inlined_call_operand.<no memory space> [shape: f32[1,1], index: 4, kind: input, shape index: {}]   ;;  %s577_s5 = inlined_call_operand.vmem [shape: f32[1,1,128], index: 5, kind: output, shape index: {}]  }
   0x1   :  { %v417_v0 = vld [vmem:[%s572_s0 + $0x4] ss:$8 sps:$4 sm:$0xff]   ;;  %411 = vset.pattern.permute.xlu0 %v453_v1  ;;  %412 = vset.pattern.permute.xlu1 %v453_v1  ;;  %v419_v2 = vld [vmem:[%s572_s0] ss:$8 sps:$4 sm:$0xff]   ;;  %v420_v3 = vld [vmem:[%s572_s0 + $0x14] ss:$8 sps:$4 sm:$0xff]  }
   0x2   :  { %166 = vmatprep.subr.bf16.mxu0 %v417_v0  ;;  %v422_v4 = vld [vmem:[%s572_s0 + $0x10] ss:$8 sps:$4 sm:$0xff]   ;;  %v423_v5 = vld [vmem:[%s572_s0 + $0x24] ss:$8 sps:$4 sm:$0xff]   ;;  %v425_v9 = vld [vmem:[%s572_s0 + $0x20] ss:$8 sps:$4 sm:$0xff]  }
   0x3   :  { %167 = vmatpush1.bf16.xpose.msra.mxu0 %v419_v2  ;;  %v443_v6 = vld [vmem:[%s573_s1 + $0x4] ss:$8 sps:$4 sm:$0xff]   ;;  %v40_v8 = vld [vmem:[%s574_s3 + $0x10] sm:$0xff]  ;;  %v41_v11 = vld [vmem:[%s574_s3 + $0x18] sm:$0xff] }
   0x4   :  { %168 = vmatprep.subr.bf16.mxu0 %v420_v3  ;;  %198 = vmatprep.mubr.bf16.mxu0 %v443_v6  ;;  %v38_v7 = vld [vmem:[%s574_s3] sm:$0xff]  ;;  %v39_v10 = vld [vmem:[%s574_s3 + $0x8] sm:$0xff]  ;;  %v426_v12 = vld [vmem:[%s572_s0 + $0x34] ss:$8 sps:$4 sm:$0xff]  }
   0x5   :  { %48 = vperm.xlu0 %411, %v38_v7   ;;  %58 = vperm.xlu1 %412, %v40_v8   ;;  %v428_v13 = vld [vmem:[%s572_s0 + $0x30] ss:$8 sps:$4 sm:$0xff]   ;;  %v429_v14 = vld [vmem:[%s572_s0 + $0x44] ss:$8 sps:$4 sm:$0xff]   ;;  %v431_v15 = vld [vmem:[%s572_s0 + $0x40] ss:$8 sps:$4 sm:$0xff]  }
   0x6   :  { %v432_v16 = vld [vmem:[%s572_s0 + $0x54] ss:$8 sps:$4 sm:$0xff]   ;;  %v434_v17 = vld [vmem:[%s572_s0 + $0x50] ss:$8 sps:$4 sm:$0xff]   ;;  %v435_v18 = vld [vmem:[%s572_s0 + $0x64] ss:$8 sps:$4 sm:$0xff]  }
   0x7   :  { %v437_v19 = vld [vmem:[%s572_s0 + $0x60] ss:$8 sps:$4 sm:$0xff]   ;;  %v438_v20 = vld [vmem:[%s572_s0 + $0x74] ss:$8 sps:$4 sm:$0xff]   ;;  %v440_v21 = vld [vmem:[%s572_s0 + $0x70] ss:$8 sps:$4 sm:$0xff]  }
   0x8   :  { %v441_v22 = vld [vmem:[%s573_s1] ss:$8 sps:$4 sm:$0xff]   ;;  %v444_v23 = vld [vmem:[%s573_s1 + $0x14] ss:$8 sps:$4 sm:$0xff]   ;;  %v446_v24 = vld [vmem:[%s573_s1 + $0x10] ss:$8 sps:$4 sm:$0xff]  }
   0x9   :  { %53 = vperm.xlu0 %411, %v39_v10   ;;  %63 = vperm.xlu1 %412, %v41_v11   ;;  %v447_v25 = vld [vmem:[%s575_s2] sm:$0xff]   ;;  %v448_v54 = vld [vmem:[%s575_s2 + $0x8] sm:$0xff]  }
   0xa   :  { %404 = vmatprep.mubr.msk.bf16.mxu1 %vm259_vm0, %v447_v25 }
   0xb   :  { %169 = vmatpush1.bf16.xpose.msra.mxu0 %v422_v4 }
   0xc   :  { %170 = vmatprep.subr.bf16.mxu0 %v423_v5 }
   0xd   :  { %414 = vset.pattern.permute.xlu1 %v454_v26  ;;  %413 = vset.pattern.permute.xlu0 %v454_v26 }
   0xe   :  { %238 = vperm.xlu1 %414, %v39_v10   ;;  %234 = vperm.xlu0 %413, %v38_v7  }
  0x12   :  { %242 = vperm.xlu1 %414, %v40_v8   ;;  %246 = vperm.xlu0 %413, %v41_v11  }
  0x13   :  { %171 = vmatpush1.bf16.xpose.msra.mxu0 %v425_v9 }
  0x14   :  { %172 = vmatprep.subr.bf16.mxu0 %v426_v12 }
  0x16   :  { %415 = vset.pattern.permute.xlu1 %v455_v27  ;;  %416 = vset.pattern.permute.xlu0 %v455_v27  ;;  %v358_v27 = vstv %s576_s4 }
  0x17   :  { %328 = vperm.xlu1 %415, %v38_v7   ;;  %332 = vperm.xlu0 %416, %v39_v10  }
  0x1b   :  { %173 = vmatpush1.bf16.xpose.msra.mxu0 %v428_v13  ;;  %336 = vperm.xlu1 %415, %v40_v8  }
  0x1c   :  { %174 = vmatprep.subr.bf16.mxu0 %v429_v14 }
  0x1f   :  { %340 = vperm.xlu1 %415, %v41_v11  }
  0x23   :  { %175 = vmatpush1.bf16.xpose.msra.mxu0 %v431_v15 }
  0x24   :  { %176 = vmatprep.subr.bf16.mxu0 %v432_v16 }
  0x2b   :  { %177 = vmatpush1.bf16.xpose.msra.mxu0 %v434_v17 }
  0x2c   :  { %178 = vmatprep.subr.bf16.mxu0 %v435_v18 }
  0x33   :  { %179 = vmatpush1.bf16.xpose.msra.mxu0 %v437_v19 }
  0x34   :  { %180 = vmatprep.subr.bf16.mxu0 %v438_v20 }
  0x3b   :  { %181 = vmatpush1.bf16.xpose.msra.mxu0 %v440_v21 }
  0x42   :  { %199 = vmatmul.mubr.bf16.vlgmr.msra.gmra.mrb[0].mxu0 %v441_v22 }
  0x43   :  { %206 = vmatprep.mubr.bf16.mxu0 %v444_v23 }
  0x4a   :  { %207 = vmatmul.mubr.bf16.gmra.mrb[4].mxu0 %v446_v24 }
  0x84   :  { %v49_v28 = vpop.permute.xlu0 %48  ;;  %v59_v37 = vpop.permute.xlu1 %58 }
  0x88   :  { %v54_v30 = vpop.permute.xlu0 %53  ;;  %v64_v45 = vpop.permute.xlu1 %63 }
  0x8d   :  { %v239_v55 = vpop.permute.xlu1 %238  ;;  %v235_v57 = vpop.permute.xlu0 %234 }
  0x91   :  { %v243_v56 = vpop.permute.xlu1 %242  ;;  %v247_v62 = vpop.permute.xlu0 %246 }
  0x96   :  { %v329_v58 = vpop.permute.xlu1 %328  ;;  %v333_v10 = vpop.permute.xlu0 %332 }
  0x9a   :  { %v337_v6 = vpop.permute.xlu1 %336 }
  0x9e   :  { %v341_v18 = vpop.permute.xlu1 %340 }
 0x115   :  { %v200_v29 = vpop.f32.mrb[0].mxu0 }
 0x116   :  { %v201_v31 = vadd.f32 %v200_v29, %v49_v28  ;;  %v202_v32 = vpop.f32.mrb[1].mxu0 }
 0x117   :  { %v203_v33 = vpop.f32.mrb[2].mxu0 }
 0x118   :  { %v219_v34 = vmul.f32 0.01, %v201_v31  ;;  %v204_v35 = vadd.f32 %v203_v33, %v54_v30  ;;  %v205_v36 = vpop.f32.mrb[3].mxu0  ;;  %vm215_vm1 = vcmp.ge.f32.partialorder %v201_v31, 0.0 }
 0x11a   :  { %v220_v38 = vmul.f32 0.01, %v204_v35  ;;  %vm216_vm2 = vcmp.ge.f32.partialorder %v204_v35, 0.0  ;;  %v223_v39 = vsel %vm215_vm1, %v201_v31, %v219_v34 }
 0x11c   :  { %v224_v40 = vsel %vm216_vm2, %v204_v35, %v220_v38 }
 0x11d   :  { %v208_v41 = vpop.f32.mrb[4].mxu0  ;;  %v231_v42 = vpack.c.bf16 %v224_v40, %v223_v39 }
 0x11e   :  { %v209_v43 = vadd.f32 %v208_v41, %v59_v37  ;;  %v210_v44 = vpop.f32.mrb[5].mxu0 }
 0x11f   :  { %v211_v46 = vpop.f32.mrb[6].mxu0  ;;  %400 = vmatprep.subr.bf16.mxu1 %v231_v42 }
 0x120   :  { %v221_v47 = vmul.f32 0.01, %v209_v43  ;;  %v212_v48 = vadd.f32 %v211_v46, %v64_v45  ;;  %v213_v49 = vpop.f32.mrb[7].mxu0  ;;  %401 = vmatpush3.bf16.msra.mxu1 %v231_v42  ;;  %vm217_vm3 = vcmp.ge.f32.partialorder %v209_v43, 0.0 }
 0x122   :  { %vm218_vm4 = vcmp.ge.f32.partialorder %v212_v48, 0.0  ;;  %v222_v50 = vmul.f32 0.01, %v212_v48  ;;  %v225_v51 = vsel %vm217_vm3, %v209_v43, %v221_v47 }
 0x124   :  { %v226_v52 = vsel %vm218_vm4, %v212_v48, %v222_v50 }
 0x125   :  { %v232_v53 = vpack.c.bf16 %v226_v52, %v225_v51 }
 0x127   :  { %402 = vmatprep.subr.bf16.mxu1 %v232_v53 }
 0x128   :  { %403 = vmatpush3.bf16.msra.mxu1 %v232_v53 }
 0x12b   :  { %405 = vmatmul.mubr.msk.bf16.vlgmr.msra.gmra.mrb[0].mxu1 %vm259_vm0, %v448_v54 }
 0x1fe   :  { %v406_v59 = vpop.f32.mrb[0].mxu1 }
 0x1ff   :  { %v309_v60 = vadd.f32 %v406_v59, %v243_v56  ;;  %v300_v61 = vpop.f32.mrb[1].mxu1 }
 0x200   :  { %v301_v63 = vadd.f32 %v300_v61, %v235_v57  ;;  %v407_v0 = vpop.f32.mrb[2].mxu1 }
 0x201   :  { %v312_v1 = vadd.f32 %v407_v0, %v247_v62  ;;  %v303_v2 = vpop.f32.mrb[3].mxu1  ;;  %v321_v3 = vmul.f32 0.01, %v309_v60  ;;  %vm317_vm6 = vcmp.ge.f32.partialorder %v309_v60, 0.0 }
 0x202   :  { %vm315_vm5 = vcmp.ge.f32.partialorder %v301_v63, 0.0  ;;  %v319_v4 = vmul.f32 0.01, %v301_v63  ;;  %v304_v5 = vadd.f32 %v303_v2, %v239_v55 }
 0x203   :  { %v322_v8 = vmul.f32 0.01, %v312_v1  ;;  %vm318_vm8 = vcmp.ge.f32.partialorder %v312_v1, 0.0  ;;  %v325_v11 = vsel %vm317_vm6, %v309_v60, %v321_v3 }
 0x204   :  { %v323_v7 = vsel %vm315_vm5, %v301_v63, %v319_v4  ;;  %v320_v9 = vmul.f32 0.01, %v304_v5  ;;  %vm316_vm7 = vcmp.ge.f32.partialorder %v304_v5, 0.0  ;;  %v345_v16 = vmul.f32 %v337_v6, %v325_v11 }
 0x205   :  { %v343_v13 = vmul.f32 %v329_v58, %v323_v7  ;;  %v326_v15 = vsel %vm318_vm8, %v312_v1, %v322_v8 }
 0x206   :  { %v324_v12 = vsel %vm316_vm7, %v304_v5, %v320_v9  ;;  %v346_v19 = vmul.f32 %v341_v18, %v326_v15 }
 0x207   :  { %v344_v14 = vmul.f32 %v333_v10, %v324_v12 }
 0x209   :  { %v347_v17 = vadd.f32 %v344_v14, %v343_v13 }
 0x20b   :  { %v348_v20 = vadd.f32 %v347_v17, %v345_v16 }
 0x20d   :  { %v349_v21 = vadd.f32 %v348_v20, %v346_v19 }
 0x20f   :  { %v350_v22 = vrot.slane %v349_v21, 4 }
 0x211   :  { %v351_v23 = vadd.f32 %v350_v22, %v349_v21 }
 0x213   :  { %v352_v24 = vrot.slane %v351_v23, 2 }
 0x215   :  { %v353_v25 = vadd.f32 %v352_v24, %v351_v23 }
 0x217   :  { %v354_v26 = vrot.slane %v353_v25, 1 }
 0x219   :  { %v355_v28 = vadd.f32 %v354_v26, %v353_v25 }
 0x21b   :  { %v359_v29 = vadd.f32 %v358_v27, %v355_v28 }
 0x21d   :  { %v360_v30 = vsub.f32 0.0, %v359_v29 }
 0x21f   :  { %v361_v31 = vmul.f32 1.442695, %v360_v30 }
 0x221   :  { %449 = vpow2.f32 %v361_v31 }
 0x22b   :  { %v450_v32 = vpop.eup %449 }
 0x22c   :  { %v363_v33 = vadd.f32 1.0, %v450_v32 }
 0x22e   :  { %451 = vrcp.f32 %v363_v33 }
 0x238   :  { %v452_v34 = vpop.eup %451 }
 0x239   :  { %v366_v35 = vmax.f32 %v452_v34, 1e-09 }
 0x23b   :  { %367 = vst [vmem:[%s577_s5] sm:$0x1] %v366_v35 }

</bundles_post_ra>
